<compile_context>
chip_gen: v6e
topology: v6e:2x2x1
jax: 0.10.0
libtpu: 0.0.40
codegen_flags: <defaults>
</compile_context>

<pallas_src>
import functools
import math

import jax
import jax.numpy as jnp
from jax.experimental import pallas as pl
from jax.experimental.pallas import tpu as pltpu


_LANES = 512      # lane-dense chunk width (multiple of 128)
_SUBLANES = 8


def _round_up(x, m):
    return ((x + m - 1) // m) * m


# ----------------------------------------------------------------------------- kernel
def _cumulative_bce_kernel(head_ref, emb_ref, tgt_ref, out_ref, *,
                           n_valid, tile_rows, lanes, tiles_per_split):
    """One grid step: partial sum of BCE(head,t)+BCE(emb,t) over one (tile_rows, lanes)
    tile, accumulated into an (8, lanes) per-split output block that stays VMEM
    resident across the 'arbitrary' tile axis."""
    c = pl.program_id(0)          # split axis ("parallel"): shards across TCs on v7x
    i = pl.program_id(1)          # tile-within-split axis ("arbitrary" reduction)

    @pl.when(i == 0)
    def _():
        out_ref[...] = jnp.zeros_like(out_ref)

    h = head_ref[...].astype(jnp.float32)
    e = emb_ref[...].astype(jnp.float32)
    t = tgt_ref[...].astype(jnp.float32)

    # Numerically stable BCE-with-logits, both terms fused, shared target multiply:
    #   bce(x) = max(x, 0) - x*t + log1p(exp(-|x|))
    # The 0.5 / 0.5 mix and the 1/N mean are folded into one scale in the wrapper.
    softplus = jnp.log1p(jnp.exp(-jnp.abs(h))) + jnp.log1p(jnp.exp(-jnp.abs(e)))
    contrib = jnp.maximum(h, 0.0) + jnp.maximum(e, 0.0) - (h + e) * t + softplus

    # Mask zero-padded tail elements (arrays were padded up to whole aligned tiles).
    row0 = (c * tiles_per_split + i) * tile_rows
    rid = jax.lax.broadcasted_iota(jnp.int32, (tile_rows, lanes), 0)
    lid = jax.lax.broadcasted_iota(jnp.int32, (tile_rows, lanes), 1)
    gidx = (row0 + rid) * lanes + lid
    contrib = jnp.where(gidx < n_valid, contrib, 0.0)

    # vreg-shaped accumulation: fold sublane groups with element-wise adds (VPU only);
    # no per-step full XLU reduction tree and no serialized scalar dependency.
    partial = jnp.sum(
        contrib.reshape(tile_rows // _SUBLANES, _SUBLANES, lanes), axis=0)
    out_ref[...] += partial


# ----------------------------------------------------------------------------- wrapper
def cumulative_bce_loss(head, output_embedding, target, *,
                        lanes=_LANES,
                        target_tile_bytes=2 * 1024 * 1024,
                        num_splits=2):
    """Pallas implementation of ComulativeBCELoss.forward (returns a scalar)."""
    assert head.shape == output_embedding.shape == target.shape, (
        head.shape, output_embedding.shape, target.shape)

    n_total = int(math.prod(head.shape))  # scalar -> 1
    itemsize = max(jnp.dtype(head.dtype).itemsize,
                   jnp.dtype(output_embedding.dtype).itemsize,
                   jnp.dtype(target.dtype).itemsize)

    # Geometry: lane-dense (rows, lanes) view; row tiles sized to ~target_tile_bytes per
    # input (multiple of 8), capped so each split gets at least one tile. Rows are padded
    # to a whole number of (tile_rows * num_splits) so every block is fully aligned.
    rows_raw = pl.cdiv(n_total, lanes)
    max_tile_rows = max(_SUBLANES,
                        (target_tile_bytes // (lanes * itemsize)) // _SUBLANES * _SUBLANES)
    tile_rows = min(max_tile_rows,
                    _round_up(pl.cdiv(rows_raw, num_splits), _SUBLANES))
    rows_padded = _round_up(rows_raw, tile_rows * num_splits)
    tiles_per_split = rows_padded // (tile_rows * num_splits)
    n_padded = rows_padded * lanes

    def prep(x):
        flat = jnp.ravel(x)
        if n_padded != n_total:
            flat = jnp.pad(flat, (0, n_padded - n_total))
        return flat.reshape(rows_padded, lanes)

    h2 = prep(head)
    e2 = prep(output_embedding)
    t2 = prep(target)

    kernel = functools.partial(
        _cumulative_bce_kernel,
        n_valid=n_total, tile_rows=tile_rows, lanes=lanes,
        tiles_per_split=tiles_per_split)

    in_spec = pl.BlockSpec((tile_rows, lanes),
                           lambda c, i: (c * tiles_per_split + i, 0))

    partials = pl.pallas_call(
        kernel,
        out_shape=jax.ShapeDtypeStruct((num_splits * _SUBLANES, lanes), jnp.float32),
        grid=(num_splits, tiles_per_split),
        in_specs=[in_spec, in_spec, in_spec],
        out_specs=pl.BlockSpec((_SUBLANES, lanes), lambda c, i: (c, 0)),
        compiler_params=pltpu.CompilerParams(
            dimension_semantics=("parallel", "arbitrary"),
            vmem_limit_bytes=32 * 1024 * 1024),
    )(h2, e2, t2)

    # Tiny final reduction (num_splits*8 x lanes) + mean + the 0.5/0.5 mix in one scale.
    return jnp.sum(partials) * jnp.float32(0.5 / n_total)


# ----------------------------------------------------------------------------- pure-JAX reference
def _bce_with_logits_mean_ref(x, t):
    x = x.astype(jnp.float32)
    t = t.astype(jnp.float32)
    return jnp.mean(jnp.maximum(x, 0.0) - x * t + jnp.log1p(jnp.exp(-jnp.abs(x))))


def cumulative_bce_loss_ref(head, output_embedding, target):
    return (0.5 * _bce_with_logits_mean_ref(head, target)
            + 0.5 * _bce_with_logits_mean_ref(output_embedding, target))


# ----------------------------------------------------------------------------- main
if __name__ == "__main__":
    key = jax.random.PRNGKey(0)
    ks = jax.random.split(key, 9)

    # Case 1: shapes consistent with the module (classification-head logits):
    # batch=2, 512 logits per sample. Exercises the padded / masked path (grid (2,1)).
    B, C = 2, 512
    head = jax.random.normal(ks[0], (B, C), jnp.float32)
    emb = jax.random.normal(ks[1], (B, C), jnp.float32)
    tgt = jax.random.bernoulli(ks[2], 0.5, (B, C)).astype(jnp.float32)

    loss = jax.block_until_ready(jax.jit(cumulative_bce_loss)(head, emb, tgt))
    ref = cumulative_bce_loss_ref(head, emb, tgt)
    assert loss.shape == ()
    assert bool(jnp.isfinite(loss))
    assert bool(jnp.allclose(loss, ref, atol=1e-5, rtol=1e-5)), (loss, ref)

    # Case 2: multi-tile accumulation across both grid axes (small tile budget forces
    # grid (2, 5); no padding needed since N is lane-aligned).
    B2, C2 = 64, 640
    head2 = jax.random.normal(ks[3], (B2, C2), jnp.float32)
    emb2 = jax.random.normal(ks[4], (B2, C2), jnp.float32)
    tgt2 = jax.random.bernoulli(ks[5], 0.5, (B2, C2)).astype(jnp.float32)

    loss2 = jax.block_until_ready(
        jax.jit(functools.partial(cumulative_bce_loss,
                                  target_tile_bytes=16 * 1024))(head2, emb2, tgt2))
    ref2 = cumulative_bce_loss_ref(head2, emb2, tgt2)
    assert bool(jnp.allclose(loss2, ref2, atol=1e-5, rtol=1e-5)), (loss2, ref2)

    # Case 3: tiny, lane-unaligned shape (exercises in-row tail masking).
    B3, C3 = 3, 7
    head3 = jax.random.normal(ks[6], (B3, C3), jnp.float32)
    emb3 = jax.random.normal(ks[7], (B3, C3), jnp.float32)
    tgt3 = jax.random.bernoulli(ks[8], 0.5, (B3, C3)).astype(jnp.float32)

    loss3 = jax.block_until_ready(jax.jit(cumulative_bce_loss)(head3, emb3, tgt3))
    ref3 = cumulative_bce_loss_ref(head3, emb3, tgt3)
    assert bool(jnp.allclose(loss3, ref3, atol=1e-5, rtol=1e-5)), (loss3, ref3)

    print("KERNEL_OK")
</pallas_src>

<mosaic_0001>
module attributes {stable_mosaic.version = 11 : i64} {
  func.func @_cumulative_bce_kernel(%arg0: i32, %arg1: i32, %arg2: memref<8x512xf32, #tpu.memory_space<vmem>>, %arg3: memref<8x512xf32, #tpu.memory_space<vmem>>, %arg4: memref<8x512xf32, #tpu.memory_space<vmem>>, %arg5: memref<8x512xf32, #tpu.memory_space<vmem>>) attributes {dimension_semantics = [#tpu.dimension_semantics<parallel>, #tpu.dimension_semantics<arbitrary>], iteration_bounds = array<i64: 2, 1>, scalar_prefetch = 0 : i64, scratch_operands = 0 : i64, tpu.core_type = #tpu.core_type<tc>, window_params = [{transform_indices = @transform_0, window_bounds = array<i64: 8, 512>}, {transform_indices = @transform_1, window_bounds = array<i64: 8, 512>}, {transform_indices = @transform_2, window_bounds = array<i64: 8, 512>}, {transform_indices = @transform_3, window_bounds = array<i64: 8, 512>}]} {
    %c0_i32 = arith.constant 0 : i32
    %0 = arith.cmpi eq, %arg1, %c0_i32 : i32
    %1 = arith.extui %0 : i1 to i32
    %c0_i32_0 = arith.constant 0 : i32
    %2 = arith.cmpi ne, %1, %c0_i32_0 : i32
    scf.if %2 {
      %cst_15 = arith.constant 0.000000e+00 : f32
      %45 = vector.broadcast %cst_15 : f32 to vector<8x512xf32>
      %c0_16 = arith.constant 0 : index
      %c0_17 = arith.constant 0 : index
      %46 = vector.load %arg5[%c0_16, %c0_17] : memref<8x512xf32, #tpu.memory_space<vmem>>, vector<8x512xf32>
      tpu.vector_store %arg5[%c0_16, %c0_17], %45 {strides = array<i32>} : memref<8x512xf32, #tpu.memory_space<vmem>>, vector<8x512xf32>,
    } else {
    }
    %c0 = arith.constant 0 : index
    %c0_1 = arith.constant 0 : index
    %3 = vector.load %arg2[%c0, %c0_1] : memref<8x512xf32, #tpu.memory_space<vmem>>, vector<8x512xf32>
    %c0_2 = arith.constant 0 : index
    %c0_3 = arith.constant 0 : index
    %4 = vector.load %arg3[%c0_2, %c0_3] : memref<8x512xf32, #tpu.memory_space<vmem>>, vector<8x512xf32>
    %c0_4 = arith.constant 0 : index
    %c0_5 = arith.constant 0 : index
    %5 = vector.load %arg4[%c0_4, %c0_5] : memref<8x512xf32, #tpu.memory_space<vmem>>, vector<8x512xf32>
    %6 = math.absf %3 : vector<8x512xf32>
    %cst = arith.constant 0.000000e+00 : f32
    %7 = vector.broadcast %cst : f32 to vector<8x512xf32>
    %8 = arith.subf %7, %6 : vector<8x512xf32>
    %9 = math.exp %8 : vector<8x512xf32>
    %10 = math.log1p %9 : vector<8x512xf32>
    %11 = math.absf %4 : vector<8x512xf32>
    %cst_6 = arith.constant 0.000000e+00 : f32
    %12 = vector.broadcast %cst_6 : f32 to vector<8x512xf32>
    %13 = arith.subf %12, %11 : vector<8x512xf32>
    %14 = math.exp %13 : vector<8x512xf32>
    %15 = math.log1p %14 : vector<8x512xf32>
    %16 = arith.addf %10, %15 : vector<8x512xf32>
    %cst_7 = arith.constant 0.000000e+00 : f32
    %17 = vector.broadcast %cst_7 : f32 to vector<8x512xf32>
    %18 = arith.maximumf %3, %17 : vector<8x512xf32>
    %cst_8 = arith.constant 0.000000e+00 : f32
    %19 = vector.broadcast %cst_8 : f32 to vector<8x512xf32>
    %20 = arith.maximumf %4, %19 : vector<8x512xf32>
    %21 = arith.addf %18, %20 : vector<8x512xf32>
    %22 = arith.addf %3, %4 : vector<8x512xf32>
    %23 = arith.mulf %22, %5 : vector<8x512xf32>
    %24 = arith.subf %21, %23 : vector<8x512xf32>
    %25 = arith.addf %24, %16 : vector<8x512xf32>
    %c1_i32 = arith.constant 1 : i32
    %26 = arith.muli %arg0, %c1_i32 : i32
    %27 = arith.addi %26, %arg1 : i32
    %c8_i32 = arith.constant 8 : i32
    %28 = arith.muli %27, %c8_i32 : i32
    %29 = tpu.iota {dimensions = array<i32: 0>} : vector<8x512xi32>
    %30 = tpu.iota {dimensions = array<i32: 1>} : vector<8x512xi32>
    %31 = vector.broadcast %28 : i32 to vector<8x512xi32>
    %32 = arith.addi %31, %29 : vector<8x512xi32>
    %c512_i32 = arith.constant 512 : i32
    %33 = vector.broadcast %c512_i32 : i32 to vector<8x512xi32>
    %34 = arith.muli %32, %33 : vector<8x512xi32>
    %35 = arith.addi %34, %30 : vector<8x512xi32>
    %c1024_i32 = arith.constant 1024 : i32
    %36 = vector.broadcast %c1024_i32 : i32 to vector<8x512xi32>
    %37 = arith.cmpi slt, %35, %36 : vector<8x512xi32>
    %cst_9 = arith.constant 0.000000e+00 : f32
    %38 = vector.broadcast %cst_9 : f32 to vector<8x512xf32>
    %39 = arith.select %37, %25, %38 : vector<8x512xi1>, vector<8x512xf32>
    %40 = vector.shape_cast %39 : vector<8x512xf32> to vector<1x8x512xf32>
    %cst_10 = arith.constant dense<0.000000e+00> : vector<8x512xf32>
    %41 = vector.multi_reduction <add>, %40, %cst_10 [0] : vector<1x8x512xf32> to vector<8x512xf32>
    %c0_11 = arith.constant 0 : index
    %c0_12 = arith.constant 0 : index
    %42 = vector.load %arg5[%c0_11, %c0_12] : memref<8x512xf32, #tpu.memory_space<vmem>>, vector<8x512xf32>
    %43 = arith.addf %42, %41 : vector<8x512xf32>
    %c0_13 = arith.constant 0 : index
    %c0_14 = arith.constant 0 : index
    %44 = vector.load %arg5[%c0_13, %c0_14] : memref<8x512xf32, #tpu.memory_space<vmem>>, vector<8x512xf32>
    tpu.vector_store %arg5[%c0_13, %c0_14], %43 {strides = array<i32>} : memref<8x512xf32, #tpu.memory_space<vmem>>, vector<8x512xf32>,
    return
  }
  func.func @transform_0(%arg0: i32, %arg1: i32) -> (i32, i32) {
    %c1_i32 = arith.constant 1 : i32
    %0 = arith.muli %arg0, %c1_i32 : i32
    %1 = arith.addi %0, %arg1 : i32
    %c0_i32 = arith.constant 0 : i32
    %c0_i32_0 = arith.constant 0 : i32
    return %1, %c0_i32 : i32, i32
  }
  func.func @transform_1(%arg0: i32, %arg1: i32) -> (i32, i32) {
    %c1_i32 = arith.constant 1 : i32
    %0 = arith.muli %arg0, %c1_i32 : i32
    %1 = arith.addi %0, %arg1 : i32
    %c0_i32 = arith.constant 0 : i32
    %c0_i32_0 = arith.constant 0 : i32
    return %1, %c0_i32 : i32, i32
  }
  func.func @transform_2(%arg0: i32, %arg1: i32) -> (i32, i32) {
    %c1_i32 = arith.constant 1 : i32
    %0 = arith.muli %arg0, %c1_i32 : i32
    %1 = arith.addi %0, %arg1 : i32
    %c0_i32 = arith.constant 0 : i32
    %c0_i32_0 = arith.constant 0 : i32
    return %1, %c0_i32 : i32, i32
  }
  func.func @transform_3(%arg0: i32, %arg1: i32) -> (i32, i32) {
    %c0_i32 = arith.constant 0 : i32
    %c0_i32_0 = arith.constant 0 : i32
    return %arg0, %c0_i32 : i32, i32
  }
}

</mosaic_0001>

<bundles_post_ra>
// kernel: cumulative_bce_loss.1
= control target key start
LH: loop header
LB: loop body
LE: loop exit
PB: predicated region body
PF: predicated region fallthrough
CT: control target
= control target key end

     0   :  { %s648_s12 = smov 0   ;;  %s650_s13 = smov 0   ;;  %s886_s0 = inlined_call_operand.vmem [shape: f32[16,512], index: 0, kind: input, shape index: {}]   ;;  %s887_s1 = inlined_call_operand.vmem [shape: f32[16,512], index: 1, kind: input, shape index: {}]   ;;  %s888_s2 = inlined_call_operand.vmem [shape: f32[16,512], index: 2, kind: input, shape index: {}]   ;;  %s889_s3 = inlined_call_operand.vmem [shape: f32[16,512], index: 3, kind: output, shape index: {}]  }
   0x1   :  { %s652_s14 = smov 0  }
   0x2 LB: > { %s25_s15 = sadd.s32 1, %s622_s13  ;;  %p531_p0 = scmp.ge.s32.totalorder %s626_s14, 1  ;;  %s626_s14 = sphi %s652_s14, %s13_s14   ;;  %s622_s13 = sphi %s650_s13, %s905_s13   ;;  %s618_s12 = sphi %s648_s12, %s904_s12  }
   0x3   : > { %p27_p1 = scmp.ge.s32.totalorder %s25_s15, 2  ;;  %p181_p2 = scmp.lt.s32.totalorder %s626_s14, 3 }
   0x5   : > { %s907_s15 = smov (%p27_p1, %s25_s15), 0  ;;  %p182_p3 = pnand %p531_p0, %p181_p2 }
   0x6   : > { %p219_p4 = scmp.lt.s32.totalorder (!%p182_p3), %s618_s12, 1  ;;  %s540_s24 = sshll.u32 (!%p182_p3), %s618_s12, 3 }
   0x7   : > { %185 = sbr.rel (%p182_p3) target bundleno = 70 (0x46), region = 32 }
   0xc   : > { %s220_s16 = scalar_select %p219_p4, %s618_s12, 1  ;;  %v402_v25 = vlaneseq  ;;  %v409_v34 = vstv %s540_s24 }
   0xe   : > { %s670_s17 = sshll.u32 %s220_s16, 5  ;;  %v403_v32 = vshrl.u32 %v402_v25, 7  ;;  %v405_v36 = vand.u32 127, %v402_v25 }
   0xf   : > { %s223_s20 = scalar_lea.vmem %s886_s0, %s670_s17  ;;  %s230_s23 = scalar_lea.vmem %s887_s1, %s670_s17 }
  0x10   : > { %v680_v0 = vld [vmem:[%s223_s20] sm:$0xff]  ;;  %v682_v1 = vld [vmem:[%s223_s20 + $0x8] sm:$0xff]  ;;  %v692_v13 = vld [vmem:[%s223_s20 + $0x10] sm:$0xff]  ;;  %s709_s27 = scalar_lea.vmem %s888_s2, %s670_s17  ;;  %v410_v37 = vadd.s32 %v409_v34, %v403_v32  ;;  %v406_v58 = vadd.s32 128, %v405_v36  ;;  %v407_v59 = vadd.s32 256, %v405_v36  ;;  %s849_s30 = scalar_lea.vmem %s889_s3, %s670_s17 }
  0x11   : > { %v684_v2 = vld [vmem:[%s230_s23] sm:$0xff]  ;;  %v264_v3 = vand.u32 2147483647, %v680_v0  ;;  %v687_v4 = vld [vmem:[%s230_s23 + $0x8] sm:$0xff]  ;;  %v265_v7 = vand.u32 2147483647, %v682_v1 }
  0x12   : > { %v316_v5 = vand.u32 2147483647, %v684_v2  ;;  %v317_v8 = vand.u32 2147483647, %v687_v4  ;;  %v694_v15 = vld [vmem:[%s230_s23 + $0x10] sm:$0xff]  ;;  %v697_v19 = vld [vmem:[%s223_s20 + $0x18] sm:$0xff]  ;;  %v384_v42 = vadd.f32 %v684_v2, %v680_v0  ;;  %v385_v48 = vadd.f32 %v687_v4, %v682_v1 }
  0x13   : > { %v268_v6 = vsub.f32 0.0, %v264_v3  ;;  %v269_v11 = vsub.f32 0.0, %v265_v7  ;;  %v266_v18 = vand.u32 2147483647, %v692_v13  ;;  %v318_v20 = vand.u32 2147483647, %v694_v15 }
  0x14   : > { %v320_v9 = vsub.f32 0.0, %v316_v5  ;;  %v321_v12 = vsub.f32 0.0, %v317_v8  ;;  %v700_v21 = vld [vmem:[%s230_s23 + $0x18] sm:$0xff]  ;;  %v267_v24 = vand.u32 2147483647, %v697_v19  ;;  %v372_v40 = vmax.f32 %v680_v0, 0.0 }
  0x15   : > { %v272_v10 = vmul.f32 1.442695, %v268_v6  ;;  %v274_v16 = vmul.f32 1.442695, %v269_v11  ;;  %v270_v22 = vsub.f32 0.0, %v266_v18  ;;  %v322_v23 = vsub.f32 0.0, %v318_v20 }
  0x16   : > { %v324_v14 = vmul.f32 1.442695, %v320_v9  ;;  %v326_v17 = vmul.f32 1.442695, %v321_v12  ;;  %v319_v27 = vand.u32 2147483647, %v700_v21  ;;  %v386_v8 = vadd.f32 %v694_v15, %v692_v13 }
  0x17   : > { %572 = vpow2.f32 %v272_v10  ;;  %v276_v26 = vmul.f32 1.442695, %v270_v22  ;;  %v328_v28 = vmul.f32 1.442695, %v322_v23  ;;  %v271_v29 = vsub.f32 0.0, %v267_v24  ;;  %v260_v44 = vld [vmem:[%s709_s27] sm:$0xff] }
  0x18   : > { %574 = vpow2.f32 %v324_v14  ;;  %v323_v30 = vsub.f32 0.0, %v319_v27  ;;  %v376_v41 = vmax.f32 %v684_v2, 0.0  ;;  %v373_v46 = vmax.f32 %v682_v1, 0.0  ;;  %v261_v50 = vld [vmem:[%s709_s27 + $0x8] sm:$0xff]  ;;  %v262_v14 = vld [vmem:[%s709_s27 + $0x10] sm:$0xff] }
  0x19   : > { %576 = vpow2.f32 %v274_v16  ;;  %v278_v31 = vmul.f32 1.442695, %v271_v29  ;;  %v377_v47 = vmax.f32 %v687_v4, 0.0  ;;  %v732_v52 = vmul.u32 512, %v410_v37 }
  0x1a   : > { %578 = vpow2.f32 %v326_v17  ;;  %v330_v33 = vmul.f32 1.442695, %v323_v30  ;;  %v734_v53 = vadd.f32 %v376_v41, %v372_v40  ;;  %v736_v54 = vmul.f32 %v384_v42, %v260_v44 }
  0x1b   : > { %580 = vpow2.f32 %v276_v26  ;;  %v739_v56 = vadd.f32 %v377_v47, %v373_v46  ;;  %v741_v57 = vmul.f32 %v385_v48, %v261_v50  ;;  %v374_v62 = vmax.f32 %v692_v13, 0.0 }
  0x1c   : > { %582 = vpow2.f32 %v328_v28  ;;  %v378_v63 = vmax.f32 %v694_v15, 0.0  ;;  %v752_v2 = vadd.s32 %v732_v52, %v405_v36  ;;  %v755_v4 = vadd.s32 384, %v405_v36 }
  0x1d   : > { %584 = vpow2.f32 %v278_v31  ;;  %v392_v5 = vsub.f32 %v734_v53, %v736_v54  ;;  %v393_v11 = vsub.f32 %v739_v56, %v741_v57  ;;  %v769_v12 = vadd.s32 %v732_v52, %v406_v58 }
  0x1e   : > { %586 = vpow2.f32 %v330_v33  ;;  %v774_v18 = vadd.f32 %v378_v63, %v374_v62  ;;  %v777_v13 = vadd.s32 %v732_v52, %v407_v59  ;;  %v783_v26 = vmul.f32 %v386_v8, %v262_v14  ;;  %v263_v14 = vld [vmem:[%s709_s27 + $0x18] sm:$0xff] }
  0x1f   : > { %vm416_vm0 = vcmp.lt.s32.totalorder %v752_v2, 1024  ;;  %v375_v30 = vmax.f32 %v697_v19, 0.0  ;;  %v379_v33 = vmax.f32 %v700_v21, 0.0  ;;  %vm417_vm4 = vcmp.lt.s32.totalorder %v769_v12, 1024 }
  0x20   : > { %v394_v63 = vsub.f32 %v774_v18, %v783_v26  ;;  %vm418_vm10 = vcmp.lt.s32.totalorder %v777_v13, 1024 }
  0x24   : > { %v711_v35 = vpop.eup %572 }
  0x25   : > { %v713_v38 = vpop.eup %574  ;;  %v280_v39 = vadd.f32 1.0, %v711_v35  ;;  %v283_v61 = vmul.f32 -0.5, %v711_v35  ;;  %v286_v15 = vand.u32 2147483647, %v711_v35 }
  0x26   : > { %v720_v43 = vpop.eup %576  ;;  %v332_v45 = vadd.f32 1.0, %v713_v38  ;;  %v335_v1 = vmul.f32 -0.5, %v713_v38  ;;  %v338_v22 = vand.u32 2147483647, %v713_v38 }
  0x27   : > { %v728_v49 = vpop.eup %578  ;;  %588 = vlog2.f32 %v280_v39  ;;  %v289_v51 = vadd.f32 1.0, %v720_v43  ;;  %v292_v6 = vmul.f32 -0.5, %v720_v43  ;;  %v284_v17 = vadd.f32 1.0, %v283_v61 }
  0x28   : > { %590 = vlog2.f32 %v332_v45  ;;  %v341_v55 = vadd.f32 1.0, %v728_v49  ;;  %v743_v60 = vpop.eup %580  ;;  %v344_v10 = vmul.f32 -0.5, %v728_v49  ;;  %v336_v20 = vadd.f32 1.0, %v335_v1 }
  0x29   : > { %592 = vlog2.f32 %v289_v51  ;;  %v748_v0 = vpop.eup %582  ;;  %v298_v3 = vadd.f32 1.0, %v743_v60  ;;  %v293_v24 = vadd.f32 1.0, %v292_v6  ;;  %v295_v25 = vand.u32 2147483647, %v720_v43 }
  0x2a   : > { %594 = vlog2.f32 %v341_v55  ;;  %v350_v7 = vadd.f32 1.0, %v748_v0  ;;  %v763_v9 = vpop.eup %584  ;;  %v345_v28 = vadd.f32 1.0, %v344_v10  ;;  %v301_v29 = vmul.f32 -0.5, %v743_v60 }
  0x2b   : > { %596 = vlog2.f32 %v298_v3  ;;  %v772_v16 = vpop.eup %586  ;;  %v307_v23 = vadd.f32 1.0, %v763_v9  ;;  %v285_v31 = vmul.f32 %v711_v35, %v284_v17  ;;  %v353_v32 = vmul.f32 -0.5, %v748_v0 }
  0x2c   : > { %598 = vlog2.f32 %v350_v7  ;;  %v359_v27 = vadd.f32 1.0, %v772_v16  ;;  %vm792_vm1 = vcmp.lt.f32.partialorder %v286_v15, 0.0004427343  ;;  %v337_v37 = vmul.f32 %v713_v38, %v336_v20 }
  0x2d   : > { %600 = vlog2.f32 %v307_v23  ;;  %vm797_vm2 = vcmp.lt.f32.partialorder %v338_v22, 0.0004427343  ;;  %v347_v40 = vand.u32 2147483647, %v728_v49  ;;  %v294_v42 = vmul.f32 %v720_v43, %v293_v24 }
  0x2e   : > { %602 = vlog2.f32 %v359_v27  ;;  %vm803_vm3 = vcmp.lt.f32.partialorder %v295_v25, 0.0004427343  ;;  %v304_v45 = vand.u32 2147483647, %v743_v60  ;;  %v346_v47 = vmul.f32 %v728_v49, %v345_v28 }
  0x2f   : > { %v302_v48 = vadd.f32 1.0, %v301_v29  ;;  %v310_v50 = vmul.f32 -0.5, %v763_v9  ;;  %v354_v55 = vadd.f32 1.0, %v353_v32  ;;  %v362_v58 = vmul.f32 -0.5, %v772_v16 }
  0x30   : > { %vm816_vm5 = vcmp.lt.f32.partialorder %v347_v40, 0.0004427343  ;;  %v356_v49 = vand.u32 2147483647, %v748_v0  ;;  %v387_v7 = vadd.f32 %v700_v21, %v697_v19  ;;  %vm828_vm6 = vcmp.lt.f32.partialorder %v304_v45, 0.0004427343 }
  0x31   : > { %v303_v8 = vmul.f32 %v743_v60, %v302_v48  ;;  %v311_v17 = vadd.f32 1.0, %v310_v50  ;;  %v313_v15 = vand.u32 2147483647, %v763_v9  ;;  %v355_v19 = vmul.f32 %v748_v0, %v354_v55 }
  0x32   : > { %v363_v21 = vadd.f32 1.0, %v362_v58  ;;  %vm840_vm7 = vcmp.lt.f32.partialorder %v356_v49, 0.0004427343  ;;  %v365_v26 = vand.u32 2147483647, %v772_v16  ;;  %v383_v0 = vadd.f32 %v379_v33, %v375_v30 }
  0x33   : > { %v312_v29 = vmul.f32 %v763_v9, %v311_v17  ;;  %vm861_vm8 = vcmp.lt.f32.partialorder %v313_v15, 0.0004427343 }
  0x34   : > { %v589_v34 = vpop.eup %588  ;;  %v364_v30 = vmul.f32 %v772_v16, %v363_v21  ;;  %vm366_vm9 = vcmp.lt.f32.partialorder %v365_v26, 0.0004427343 }
  0x35   : > { %v591_v41 = vpop.eup %590  ;;  %v282_v35 = vmul.f32 0.6931472, %v589_v34  ;;  %v415_v34 = vadd.s32 %v732_v52, %v755_v4 }
  0x36   : > { %v593_v46 = vpop.eup %592  ;;  %v334_v38 = vmul.f32 0.6931472, %v591_v41 }
  0x37   : > { %v288_v51 = vsel %vm792_vm1, %v285_v31, %v282_v35  ;;  %v291_v43 = vmul.f32 0.6931472, %v593_v46  ;;  %v595_v59 = vpop.eup %594  ;;  %vm419_vm11 = vcmp.lt.s32.totalorder %v415_v34, 1024 }
  0x38   : > { %v340_v61 = vsel %vm797_vm2, %v337_v37, %v334_v38  ;;  %v343_v6 = vmul.f32 0.6931472, %v595_v59  ;;  %v597_v18 = vpop.eup %596 }
  0x39   : > { %v368_v1 = vadd.f32 %v340_v61, %v288_v51  ;;  %v297_v3 = vsel %vm803_vm3, %v294_v42, %v291_v43  ;;  %v599_v60 = vpop.eup %598  ;;  %v300_v24 = vmul.f32 0.6931472, %v597_v18 }
  0x3a   : > { %v349_v22 = vsel %vm816_vm5, %v346_v47, %v343_v6  ;;  %v352_v54 = vmul.f32 0.6931472, %v599_v60  ;;  %v601_v31 = vpop.eup %600 }
  0x3b   : > { %v396_v20 = vadd.f32 %v392_v5, %v368_v1  ;;  %v369_v23 = vadd.f32 %v349_v22, %v297_v3  ;;  %v391_v5 = vmul.f32 %v387_v7, %v263_v14  ;;  %v306_v28 = vsel %vm828_vm6, %v303_v8, %v300_v24  ;;  %v603_v33 = vpop.eup %602 }
  0x3c   : > { %v358_v32 = vsel %vm840_vm7, %v355_v19, %v352_v54  ;;  %v361_v9 = vmul.f32 0.6931472, %v603_v33 }
  0x3d   : > { %v420_v53 = vsel %vm416_vm0, %v396_v20, 0.0  ;;  %v397_v27 = vadd.f32 %v393_v11, %v369_v23  ;;  %v370_v57 = vadd.f32 %v358_v32, %v306_v28  ;;  %v309_v11 = vmul.f32 0.6931472, %v601_v31 }
  0x3e   : > { %436 = vst [vmem:[%s849_s30] sm:$0xff] %v420_v53  ;;  %v395_v37 = vsub.f32 %v383_v0, %v391_v5  ;;  %v367_v39 = vsel %vm366_vm9, %v364_v30, %v361_v9 }
  0x3f   : > { %v421_v56 = vsel %vm417_vm4, %v397_v27, 0.0  ;;  %v398_v36 = vadd.f32 %v394_v63, %v370_v57  ;;  %v315_v16 = vsel %vm861_vm8, %v312_v29, %v309_v11 }
  0x40   : > { %437 = vst [vmem:[%s849_s30 + $0x8] sm:$0xff] %v421_v56  ;;  %v371_v40 = vadd.f32 %v367_v39, %v315_v16 }
  0x41   : > { %v422_v12 = vsel %vm418_vm10, %v398_v36, 0.0 }
  0x42   : > { %v399_v41 = vadd.f32 %v395_v37, %v371_v40  ;;  %438 = vst [vmem:[%s849_s30 + $0x10] sm:$0xff] %v422_v12 }
  0x44   : > { %v423_v35 = vsel %vm419_vm11, %v399_v41, 0.0 }
  0x45   : > { %439 = vst [vmem:[%s849_s30 + $0x18] sm:$0xff] %v423_v35 }
  0x46 PF: > { %s13_s14 = sadd.s32 1, %s626_s14   ;;  %s904_s12 = smov %s622_s13 }
  0x47   : > { %p10_p5 = scmp.ge.s32.totalorder %s13_s14, 4   ;;  %s905_s13 = smov %s907_s15 }
  0x49   :  { %12 = sbr.rel (!%p10_p5) target bundleno = 2 (0x2), region = 72 }

</bundles_post_ra>
